<compile_context>
chip_gen: v5e
topology: v5e:2x2
jax: 0.10.0
libtpu: 0.0.40
codegen_flags: <defaults>
</compile_context>

<pallas_src>
import math

import jax
import jax.numpy as jnp
import numpy as np
from jax.experimental import pallas as pl
from jax.experimental.pallas import tpu as pltpu


def _round_up(n, m):
    return ((n + m - 1) // m) * m


def _pack_width(hidden_size, num_outputs):
    """Lane-dense output slab width: [h0 | h1 | fc(padded)] rounded up to 128."""
    return _round_up(2 * hidden_size + max(1, num_outputs), 128)


def _packed_row_layout(num_inputs, hidden_size):
    """Row layout of the packed per-net parameter matrix.

    Blocks (each block = weight rows followed by one bias row, gate order [r|z|n]):
      0: W_ih layer0   (num_inputs + 1, 3H)
      1: W_hh layer0   (H + 1,          3H)
      2: W_ih layer1   (H + 1,          3H)
      3: W_hh layer1   (H + 1,          3H)
      4: W_fc          (H + 1,          num_outputs -> zero-padded)
    Each block start/extent is padded to a multiple of 8 rows (sublane aligned);
    padding rows are zero.

    Returns (offsets, true_sizes, padded_sizes, total_padded_rows).
    """
    sizes = [num_inputs + 1] + [hidden_size + 1] * 4
    padded = [_round_up(s, 8) for s in sizes]
    offsets, off = [], 0
    for p in padded:
        offsets.append(off)
        off += p
    return offsets, sizes, padded, off


# -----------------------------------------------------------------------------
# Kernel
# -----------------------------------------------------------------------------
def _actor_critic_gru_kernel(x_ref, hc_ref, ha_ref, p_ref, out_ref):
    """Fused critic+actor GRU step.  grid=() -> runs exactly once.

    x_ref:   (B, NI)            shared observation
    hc_ref:  (2, B, H)          critic hidden (layer0, layer1)
    ha_ref:  (2, B, H)          actor hidden
    p_ref:   (2, PROWS, PCOLS)  packed bias-folded weights, axis0 = [critic, actor]
    out_ref: (2, B, PACK)       lane-dense slab [h0_new | h1_new | fc(padded)]
    """
    B, NI = x_ref.shape
    H = hc_ref.shape[-1]
    PACK = out_ref.shape[-1]
    FCW = PACK - 2 * H
    offs, _sizes, padded, _total = _packed_row_layout(NI, H)

    def aug(v):
        """Append a [1, 0, ..., 0] column block so width hits the padded
        row count of the matching weight block (keeps K a multiple of 8 and
        folds the bias row of the weight into the matmul)."""
        n = v.shape[-1]
        w = _round_up(n + 1, 8) - n
        one = jnp.ones((B, 1), jnp.float32)
        if w > 1:
            pad = jnp.concatenate([one, jnp.zeros((B, w - 1), jnp.float32)], axis=-1)
        else:
            pad = one
        return jnp.concatenate([v, pad], axis=-1)

    x_aug = aug(x_ref[...])  # shared by both nets; built once

    def gru_cell(x_aug_in, h, w_ih, w_hh):
        # Fused-gate, bias-folded MXU matmuls.  PyTorch semantics: b_hh (incl.
        # b_hn) is folded into h_all, so b_hn stays inside the r*(...) term.
        i_all = jnp.dot(x_aug_in, w_ih, preferred_element_type=jnp.float32)
        h_all = jnp.dot(aug(h), w_hh, preferred_element_type=jnp.float32)
        s = i_all + h_all                       # one full (B, 3H) add
        rz = jax.nn.sigmoid(s[:, :2 * H])       # r and z in a single EUP issue
        r = rz[:, :H]
        z = rz[:, H:]
        n = jnp.tanh(i_all[:, 2 * H:3 * H] + r * h_all[:, 2 * H:3 * H])
        return (1.0 - z) * n + z * h

    # Unrolled over the two independent networks: 0 = critic, 1 = actor.
    for net, h_ref in enumerate((hc_ref, ha_ref)):
        # Static, sublane-aligned slices of the single packed parameter array.
        w_ih0 = p_ref[net, offs[0]:offs[0] + padded[0], 0:3 * H]
        w_hh0 = p_ref[net, offs[1]:offs[1] + padded[1], 0:3 * H]
        w_ih1 = p_ref[net, offs[2]:offs[2] + padded[2], 0:3 * H]
        w_hh1 = p_ref[net, offs[3]:offs[3] + padded[3], 0:3 * H]
        w_fc = p_ref[net, offs[4]:offs[4] + padded[4], 0:FCW]

        h0_new = gru_cell(x_aug, h_ref[0], w_ih0, w_hh0)
        # TODO(synk): inter-layer dropout (p=0.2) is train-mode only; eval
        #             semantics (identity) implemented here.
        h1_new = gru_cell(aug(h0_new), h_ref[1], w_ih1, w_hh1)

        # fc(relu(out[-1])) with the fc bias folded into w_fc's bias row.
        fc = jnp.dot(aug(jnp.maximum(h1_new, 0.0)), w_fc,
                     preferred_element_type=jnp.float32)

        # One lane-dense (B, 128)-wide store per net.
        out_ref[net] = jnp.concatenate([h0_new, h1_new, fc], axis=-1)


# -----------------------------------------------------------------------------
# Wrapper (ActorCriticGRU.sample semantics, eval mode)
# -----------------------------------------------------------------------------
def actor_critic_gru_forward(x, hidden_critic, hidden_actor, packed_params,
                             log_std_bias):
    """x: (B, num_inputs); hidden_*: (2, B, H); packed_params: (2, PROWS, PCOLS).

    Returns (mu, std, value, new_hidden_critic, new_hidden_actor).
    """
    B, _num_inputs = x.shape
    H = hidden_critic.shape[-1]
    num_outputs = log_std_bias.shape[0]
    pack = _pack_width(H, num_outputs)

    vmem = lambda: pl.BlockSpec(memory_space=pltpu.MemorySpace.VMEM)
    packed = pl.pallas_call(
        _actor_critic_gru_kernel,
        out_shape=jax.ShapeDtypeStruct((2, B, pack), jnp.float32),
        in_specs=[vmem(), vmem(), vmem(), vmem()],
        out_specs=vmem(),
    )(x, hidden_critic, hidden_actor, packed_params)

    # Unpack the lane-dense slab (wrapper-side layout plumbing only).
    new_hidden_critic = jnp.stack([packed[0, :, :H], packed[0, :, H:2 * H]], axis=0)
    new_hidden_actor = jnp.stack([packed[1, :, :H], packed[1, :, H:2 * H]], axis=0)
    value = packed[0, :, 2 * H:2 * H + 1]
    mu = packed[1, :, 2 * H:2 * H + num_outputs]
    # std = AddBias(zeros_like(mu)).exp() -> exp(log_std_bias) broadcast to mu.
    std = jnp.broadcast_to(jnp.exp(log_std_bias)[None, :], mu.shape)
    return mu, std, value, new_hidden_critic, new_hidden_actor


# -----------------------------------------------------------------------------
# Parameter construction (PyTorch-matching init, packed bias-folded layout)
# -----------------------------------------------------------------------------
def _init_grunet_packed(key, num_inputs, num_outputs, hidden_size, pcols):
    """One GRUNet's parameters packed into a (PROWS, pcols) matrix.

    PyTorch init range U(-1/sqrt(H), 1/sqrt(H)) for every GRU/Linear weight and
    bias.  Each block's last real row is its bias; all padding rows/cols are 0.
    If loading a torch checkpoint instead: weight_ih_l{k}/weight_hh_l{k} are
    stored as (3H, in)/(3H, H) with gate order [r|z|n] -> transpose before
    packing, and put bias_* into the block's bias row.
    """
    H = hidden_size
    k = 1.0 / math.sqrt(H)
    keys = jax.random.split(key, 10)

    def u(kk, shape):
        return jax.random.uniform(kk, shape, jnp.float32, minval=-k, maxval=k)

    blocks = [
        jnp.concatenate([u(keys[0], (num_inputs, 3 * H)), u(keys[1], (1, 3 * H))], 0),
        jnp.concatenate([u(keys[2], (H, 3 * H)), u(keys[3], (1, 3 * H))], 0),
        jnp.concatenate([u(keys[4], (H, 3 * H)), u(keys[5], (1, 3 * H))], 0),
        jnp.concatenate([u(keys[6], (H, 3 * H)), u(keys[7], (1, 3 * H))], 0),
        jnp.concatenate([u(keys[8], (H, num_outputs)), u(keys[9], (1, num_outputs))], 0),
    ]
    offsets, sizes, _padded, total_rows = _packed_row_layout(num_inputs, H)
    packed = jnp.zeros((total_rows, pcols), jnp.float32)
    for off, size, blk in zip(offsets, sizes, blocks):
        packed = packed.at[off:off + size, :blk.shape[1]].set(blk)
    return packed


def init_actor_critic_params(key, num_inputs, num_outputs, hidden_size):
    """Critic (fc out = 1) and actor (fc out = num_outputs), stacked on axis 0."""
    pack = _pack_width(hidden_size, num_outputs)
    fcw = pack - 2 * hidden_size
    pcols = _round_up(max(3 * hidden_size, fcw), 128)   # lane-aligned columns
    k_c, k_a = jax.random.split(key)
    critic = _init_grunet_packed(k_c, num_inputs, 1, hidden_size, pcols)
    actor = _init_grunet_packed(k_a, num_inputs, num_outputs, hidden_size, pcols)
    return jnp.stack([critic, actor], axis=0)           # (2, PROWS, pcols)


# -----------------------------------------------------------------------------
# Pure-JAX reference (PyTorch-faithful, eval mode) for correctness checking
# -----------------------------------------------------------------------------
def _reference_forward(x, hidden_critic, hidden_actor, packed_params, log_std_bias):
    B, num_inputs = x.shape
    H = hidden_critic.shape[-1]
    num_outputs = log_std_bias.shape[0]
    offs, sizes, _padded, _total = _packed_row_layout(num_inputs, H)
    prec = jax.lax.Precision.HIGHEST

    def unpack(p2d, i, cols):
        blk = p2d[offs[i]:offs[i] + sizes[i], :cols]
        return blk[:-1, :], blk[-1:, :]

    def gru_cell(xx, h, w_ih, b_ih, w_hh, b_hh):
        i_all = jnp.dot(xx, w_ih, precision=prec) + b_ih
        h_all = jnp.dot(h, w_hh, precision=prec) + b_hh
        r = jax.nn.sigmoid(i_all[:, :H] + h_all[:, :H])
        z = jax.nn.sigmoid(i_all[:, H:2 * H] + h_all[:, H:2 * H])
        n = jnp.tanh(i_all[:, 2 * H:] + r * h_all[:, 2 * H:])
        return (1.0 - z) * n + z * h

    def grunet(p2d, h, n_out):
        w_ih0, b_ih0 = unpack(p2d, 0, 3 * H)
        w_hh0, b_hh0 = unpack(p2d, 1, 3 * H)
        w_ih1, b_ih1 = unpack(p2d, 2, 3 * H)
        w_hh1, b_hh1 = unpack(p2d, 3, 3 * H)
        w_fc, b_fc = unpack(p2d, 4, n_out)
        h0 = gru_cell(x, h[0], w_ih0, b_ih0, w_hh0, b_hh0)
        h1 = gru_cell(h0, h[1], w_ih1, b_ih1, w_hh1, b_hh1)
        out = jnp.dot(jnp.maximum(h1, 0.0), w_fc, precision=prec) + b_fc
        return out, jnp.stack([h0, h1], axis=0)

    value, new_hc = grunet(packed_params[0], hidden_critic, 1)
    mu, new_ha = grunet(packed_params[1], hidden_actor, num_outputs)
    std = jnp.broadcast_to(jnp.exp(log_std_bias)[None, :], mu.shape)
    return mu, std, value, new_hc, new_ha


if __name__ == "__main__":
    B = 2            # batch
    NUM_INPUTS = 16  # num_inputs
    HIDDEN = 32      # hidden_size
    NUM_OUTPUTS = 4  # num_outputs (actor); critic head has 1
    N_LAYERS = 2

    key = jax.random.PRNGKey(0)
    k_x, k_hc, k_ha, k_p = jax.random.split(key, 4)

    params = init_actor_critic_params(k_p, NUM_INPUTS, NUM_OUTPUTS, HIDDEN)
    # AddBias(torch.zeros(num_outputs)) -> bias initialized to zeros.
    log_std_bias = jnp.zeros((NUM_OUTPUTS,), jnp.float32)

    x = jax.random.normal(k_x, (B, NUM_INPUTS), jnp.float32)
    # Random hidden states (valid inputs to sample()) to exercise every term.
    hidden_critic = 0.5 * jax.random.normal(k_hc, (N_LAYERS, B, HIDDEN), jnp.float32)
    hidden_actor = 0.5 * jax.random.normal(k_ha, (N_LAYERS, B, HIDDEN), jnp.float32)

    fwd = jax.jit(actor_critic_gru_forward)
    mu, std, value, new_hc, new_ha = fwd(
        x, hidden_critic, hidden_actor, params, log_std_bias)
    jax.block_until_ready((mu, std, value, new_hc, new_ha))

    assert mu.shape == (B, NUM_OUTPUTS)
    assert std.shape == (B, NUM_OUTPUTS)
    assert value.shape == (B, 1)
    assert new_hc.shape == (N_LAYERS, B, HIDDEN)
    assert new_ha.shape == (N_LAYERS, B, HIDDEN)

    # Numerical check against the pure-JAX PyTorch-faithful reference.
    r_mu, r_std, r_value, r_hc, r_ha = _reference_forward(
        x, hidden_critic, hidden_actor, params, log_std_bias)
    for got, ref in ((mu, r_mu), (std, r_std), (value, r_value),
                     (new_hc, r_hc), (new_ha, r_ha)):
        np.testing.assert_allclose(np.asarray(got), np.asarray(ref),
                                   rtol=1e-3, atol=1e-3)

    print("KERNEL_OK")
</pallas_src>

<mosaic_0001>
module attributes {stable_mosaic.version = 11 : i64} {
  func.func @_actor_critic_gru_kernel(%arg0: memref<2x16xf32, #tpu.memory_space<vmem>>, %arg1: memref<2x2x32xf32, #tpu.memory_space<vmem>>, %arg2: memref<2x2x32xf32, #tpu.memory_space<vmem>>, %arg3: memref<2x184x128xf32, #tpu.memory_space<vmem>>, %arg4: memref<2x2x128xf32, #tpu.memory_space<vmem>>) attributes {dimension_semantics = [], scalar_prefetch = 0 : i64, scratch_operands = 0 : i64, tpu.core_type = #tpu.core_type<tc>} {
    %c0 = arith.constant 0 : index
    %c0_0 = arith.constant 0 : index
    %0 = vector.load %arg0[%c0, %c0_0] : memref<2x16xf32, #tpu.memory_space<vmem>>, vector<2x16xf32>
    %cst = arith.constant 1.000000e+00 : f32
    %1 = vector.broadcast %cst : f32 to vector<2x1xf32>
    %cst_1 = arith.constant 0.000000e+00 : f32
    %2 = vector.broadcast %cst_1 : f32 to vector<2x7xf32>
    %3 = tpu.concatenate %1, %2 in 1 : vector<2x1xf32>, vector<2x7xf32> -> vector<2x8xf32>
    %4 = tpu.concatenate %0, %3 in 1 : vector<2x16xf32>, vector<2x8xf32> -> vector<2x24xf32>
    %c0_2 = arith.constant 0 : index
    %c0_3 = arith.constant 0 : index
    %c0_4 = arith.constant 0 : index
    %5 = vector.load %arg3[%c0_2, %c0_3, %c0_4] : memref<2x184x128xf32, #tpu.memory_space<vmem>>, vector<1x24x96xf32>
    %6 = vector.shape_cast %5 : vector<1x24x96xf32> to vector<24x96xf32>
    %c0_5 = arith.constant 0 : index
    %c24 = arith.constant 24 : index
    %c0_6 = arith.constant 0 : index
    %7 = vector.load %arg3[%c0_5, %c24, %c0_6] : memref<2x184x128xf32, #tpu.memory_space<vmem>>, vector<1x40x96xf32>
    %8 = vector.shape_cast %7 : vector<1x40x96xf32> to vector<40x96xf32>
    %c0_7 = arith.constant 0 : index
    %c64 = arith.constant 64 : index
    %c0_8 = arith.constant 0 : index
    %9 = vector.load %arg3[%c0_7, %c64, %c0_8] : memref<2x184x128xf32, #tpu.memory_space<vmem>>, vector<1x40x96xf32>
    %10 = vector.shape_cast %9 : vector<1x40x96xf32> to vector<40x96xf32>
    %c0_9 = arith.constant 0 : index
    %c104 = arith.constant 104 : index
    %c0_10 = arith.constant 0 : index
    %11 = vector.load %arg3[%c0_9, %c104, %c0_10] : memref<2x184x128xf32, #tpu.memory_space<vmem>>, vector<1x40x96xf32>
    %12 = vector.shape_cast %11 : vector<1x40x96xf32> to vector<40x96xf32>
    %c0_11 = arith.constant 0 : index
    %c144 = arith.constant 144 : index
    %c0_12 = arith.constant 0 : index
    %13 = vector.load %arg3[%c0_11, %c144, %c0_12] : memref<2x184x128xf32, #tpu.memory_space<vmem>>, vector<1x40x64xf32>
    %14 = vector.shape_cast %13 : vector<1x40x64xf32> to vector<40x64xf32>
    %c0_13 = arith.constant 0 : index
    %c0_14 = arith.constant 0 : index
    %c0_15 = arith.constant 0 : index
    %15 = vector.load %arg1[%c0_13, %c0_14, %c0_15] : memref<2x2x32xf32, #tpu.memory_space<vmem>>, vector<1x2x32xf32>
    %16 = vector.shape_cast %15 : vector<1x2x32xf32> to vector<2x32xf32>
    %cst_16 = arith.constant dense<0.000000e+00> : vector<2x96xf32>
    %17 = tpu.matmul %4, %6, %cst_16 {dimension_numbers = #tpu.dot_dimension_numbers<[1], [0], [0], [1], [0, 0, 1, 1], [], []>} : vector<2x24xf32>, vector<24x96xf32>, vector<2x96xf32> -> vector<2x96xf32>
    %cst_17 = arith.constant 1.000000e+00 : f32
    %18 = vector.broadcast %cst_17 : f32 to vector<2x1xf32>
    %cst_18 = arith.constant 0.000000e+00 : f32
    %19 = vector.broadcast %cst_18 : f32 to vector<2x7xf32>
    %20 = tpu.concatenate %18, %19 in 1 : vector<2x1xf32>, vector<2x7xf32> -> vector<2x8xf32>
    %21 = tpu.concatenate %16, %20 in 1 : vector<2x32xf32>, vector<2x8xf32> -> vector<2x40xf32>
    %cst_19 = arith.constant dense<0.000000e+00> : vector<2x96xf32>
    %22 = tpu.matmul %21, %8, %cst_19 {dimension_numbers = #tpu.dot_dimension_numbers<[1], [0], [0], [1], [0, 0, 1, 1], [], []>} : vector<2x40xf32>, vector<40x96xf32>, vector<2x96xf32> -> vector<2x96xf32>
    %23 = arith.addf %17, %22 : vector<2x96xf32>
    %24 = vector.extract_strided_slice %23 {offsets = [0, 0], sizes = [2, 64], strides = [1, 1]} : vector<2x96xf32> to vector<2x64xf32>
    %25 = arith.negf %24 : vector<2x64xf32>
    %26 = math.exp %25 : vector<2x64xf32>
    %cst_20 = arith.constant 1.000000e+00 : f32
    %27 = vector.broadcast %cst_20 : f32 to vector<2x64xf32>
    %28 = arith.addf %27, %26 : vector<2x64xf32>
    %29 = arith.divf %27, %28 : vector<2x64xf32>
    %30 = vector.extract_strided_slice %29 {offsets = [0, 0], sizes = [2, 32], strides = [1, 1]} : vector<2x64xf32> to vector<2x32xf32>
    %31 = vector.extract_strided_slice %29 {offsets = [0, 32], sizes = [2, 32], strides = [1, 1]} : vector<2x64xf32> to vector<2x32xf32>
    %32 = vector.extract_strided_slice %17 {offsets = [0, 64], sizes = [2, 32], strides = [1, 1]} : vector<2x96xf32> to vector<2x32xf32>
    %33 = vector.extract_strided_slice %22 {offsets = [0, 64], sizes = [2, 32], strides = [1, 1]} : vector<2x96xf32> to vector<2x32xf32>
    %34 = arith.mulf %30, %33 : vector<2x32xf32>
    %35 = arith.addf %32, %34 : vector<2x32xf32>
    %36 = math.tanh %35 : vector<2x32xf32>
    %cst_21 = arith.constant 1.000000e+00 : f32
    %37 = vector.broadcast %cst_21 : f32 to vector<2x32xf32>
    %38 = arith.subf %37, %31 : vector<2x32xf32>
    %39 = arith.mulf %38, %36 : vector<2x32xf32>
    %40 = arith.mulf %31, %16 : vector<2x32xf32>
    %41 = arith.addf %39, %40 : vector<2x32xf32>
    %cst_22 = arith.constant 1.000000e+00 : f32
    %42 = vector.broadcast %cst_22 : f32 to vector<2x1xf32>
    %cst_23 = arith.constant 0.000000e+00 : f32
    %43 = vector.broadcast %cst_23 : f32 to vector<2x7xf32>
    %44 = tpu.concatenate %42, %43 in 1 : vector<2x1xf32>, vector<2x7xf32> -> vector<2x8xf32>
    %45 = tpu.concatenate %41, %44 in 1 : vector<2x32xf32>, vector<2x8xf32> -> vector<2x40xf32>
    %c1 = arith.constant 1 : index
    %c0_24 = arith.constant 0 : index
    %c0_25 = arith.constant 0 : index
    %46 = vector.load %arg1[%c1, %c0_24, %c0_25] : memref<2x2x32xf32, #tpu.memory_space<vmem>>, vector<1x2x32xf32>
    %47 = vector.shape_cast %46 : vector<1x2x32xf32> to vector<2x32xf32>
    %cst_26 = arith.constant dense<0.000000e+00> : vector<2x96xf32>
    %48 = tpu.matmul %45, %10, %cst_26 {dimension_numbers = #tpu.dot_dimension_numbers<[1], [0], [0], [1], [0, 0, 1, 1], [], []>} : vector<2x40xf32>, vector<40x96xf32>, vector<2x96xf32> -> vector<2x96xf32>
    %cst_27 = arith.constant 1.000000e+00 : f32
    %49 = vector.broadcast %cst_27 : f32 to vector<2x1xf32>
    %cst_28 = arith.constant 0.000000e+00 : f32
    %50 = vector.broadcast %cst_28 : f32 to vector<2x7xf32>
    %51 = tpu.concatenate %49, %50 in 1 : vector<2x1xf32>, vector<2x7xf32> -> vector<2x8xf32>
    %52 = tpu.concatenate %47, %51 in 1 : vector<2x32xf32>, vector<2x8xf32> -> vector<2x40xf32>
    %cst_29 = arith.constant dense<0.000000e+00> : vector<2x96xf32>
    %53 = tpu.matmul %52, %12, %cst_29 {dimension_numbers = #tpu.dot_dimension_numbers<[1], [0], [0], [1], [0, 0, 1, 1], [], []>} : vector<2x40xf32>, vector<40x96xf32>, vector<2x96xf32> -> vector<2x96xf32>
    %54 = arith.addf %48, %53 : vector<2x96xf32>
    %55 = vector.extract_strided_slice %54 {offsets = [0, 0], sizes = [2, 64], strides = [1, 1]} : vector<2x96xf32> to vector<2x64xf32>
    %56 = arith.negf %55 : vector<2x64xf32>
    %57 = math.exp %56 : vector<2x64xf32>
    %cst_30 = arith.constant 1.000000e+00 : f32
    %58 = vector.broadcast %cst_30 : f32 to vector<2x64xf32>
    %59 = arith.addf %58, %57 : vector<2x64xf32>
    %60 = arith.divf %58, %59 : vector<2x64xf32>
    %61 = vector.extract_strided_slice %60 {offsets = [0, 0], sizes = [2, 32], strides = [1, 1]} : vector<2x64xf32> to vector<2x32xf32>
    %62 = vector.extract_strided_slice %60 {offsets = [0, 32], sizes = [2, 32], strides = [1, 1]} : vector<2x64xf32> to vector<2x32xf32>
    %63 = vector.extract_strided_slice %48 {offsets = [0, 64], sizes = [2, 32], strides = [1, 1]} : vector<2x96xf32> to vector<2x32xf32>
    %64 = vector.extract_strided_slice %53 {offsets = [0, 64], sizes = [2, 32], strides = [1, 1]} : vector<2x96xf32> to vector<2x32xf32>
    %65 = arith.mulf %61, %64 : vector<2x32xf32>
    %66 = arith.addf %63, %65 : vector<2x32xf32>
    %67 = math.tanh %66 : vector<2x32xf32>
    %cst_31 = arith.constant 1.000000e+00 : f32
    %68 = vector.broadcast %cst_31 : f32 to vector<2x32xf32>
    %69 = arith.subf %68, %62 : vector<2x32xf32>
    %70 = arith.mulf %69, %67 : vector<2x32xf32>
    %71 = arith.mulf %62, %47 : vector<2x32xf32>
    %72 = arith.addf %70, %71 : vector<2x32xf32>
    %cst_32 = arith.constant 0.000000e+00 : f32
    %73 = vector.broadcast %cst_32 : f32 to vector<2x32xf32>
    %74 = arith.maximumf %72, %73 : vector<2x32xf32>
    %cst_33 = arith.constant 1.000000e+00 : f32
    %75 = vector.broadcast %cst_33 : f32 to vector<2x1xf32>
    %cst_34 = arith.constant 0.000000e+00 : f32
    %76 = vector.broadcast %cst_34 : f32 to vector<2x7xf32>
    %77 = tpu.concatenate %75, %76 in 1 : vector<2x1xf32>, vector<2x7xf32> -> vector<2x8xf32>
    %78 = tpu.concatenate %74, %77 in 1 : vector<2x32xf32>, vector<2x8xf32> -> vector<2x40xf32>
    %cst_35 = arith.constant dense<0.000000e+00> : vector<2x64xf32>
    %79 = tpu.matmul %78, %14, %cst_35 {dimension_numbers = #tpu.dot_dimension_numbers<[1], [0], [0], [1], [0, 0, 1, 1], [], []>} : vector<2x40xf32>, vector<40x64xf32>, vector<2x64xf32> -> vector<2x64xf32>
    %80 = tpu.concatenate %41, %72, %79 in 1 : vector<2x32xf32>, vector<2x32xf32>, vector<2x64xf32> -> vector<2x128xf32>
    %c0_36 = arith.constant 0 : index
    %c0_37 = arith.constant 0 : index
    %c0_38 = arith.constant 0 : index
    %81 = vector.load %arg4[%c0_36, %c0_37, %c0_38] : memref<2x2x128xf32, #tpu.memory_space<vmem>>, vector<1x2x128xf32>
    %82 = vector.shape_cast %81 : vector<1x2x128xf32> to vector<2x128xf32>
    %83 = vector.shape_cast %80 : vector<2x128xf32> to vector<1x2x128xf32>
    tpu.vector_store %arg4[%c0_36, %c0_37, %c0_38], %83 {strides = array<i32>} : memref<2x2x128xf32, #tpu.memory_space<vmem>>, vector<1x2x128xf32>,
    %c1_39 = arith.constant 1 : index
    %c0_40 = arith.constant 0 : index
    %c0_41 = arith.constant 0 : index
    %84 = vector.load %arg3[%c1_39, %c0_40, %c0_41] : memref<2x184x128xf32, #tpu.memory_space<vmem>>, vector<1x24x96xf32>
    %85 = vector.shape_cast %84 : vector<1x24x96xf32> to vector<24x96xf32>
    %c1_42 = arith.constant 1 : index
    %c24_43 = arith.constant 24 : index
    %c0_44 = arith.constant 0 : index
    %86 = vector.load %arg3[%c1_42, %c24_43, %c0_44] : memref<2x184x128xf32, #tpu.memory_space<vmem>>, vector<1x40x96xf32>
    %87 = vector.shape_cast %86 : vector<1x40x96xf32> to vector<40x96xf32>
    %c1_45 = arith.constant 1 : index
    %c64_46 = arith.constant 64 : index
    %c0_47 = arith.constant 0 : index
    %88 = vector.load %arg3[%c1_45, %c64_46, %c0_47] : memref<2x184x128xf32, #tpu.memory_space<vmem>>, vector<1x40x96xf32>
    %89 = vector.shape_cast %88 : vector<1x40x96xf32> to vector<40x96xf32>
    %c1_48 = arith.constant 1 : index
    %c104_49 = arith.constant 104 : index
    %c0_50 = arith.constant 0 : index
    %90 = vector.load %arg3[%c1_48, %c104_49, %c0_50] : memref<2x184x128xf32, #tpu.memory_space<vmem>>, vector<1x40x96xf32>
    %91 = vector.shape_cast %90 : vector<1x40x96xf32> to vector<40x96xf32>
    %c1_51 = arith.constant 1 : index
    %c144_52 = arith.constant 144 : index
    %c0_53 = arith.constant 0 : index
    %92 = vector.load %arg3[%c1_51, %c144_52, %c0_53] : memref<2x184x128xf32, #tpu.memory_space<vmem>>, vector<1x40x64xf32>
    %93 = vector.shape_cast %92 : vector<1x40x64xf32> to vector<40x64xf32>
    %c0_54 = arith.constant 0 : index
    %c0_55 = arith.constant 0 : index
    %c0_56 = arith.constant 0 : index
    %94 = vector.load %arg2[%c0_54, %c0_55, %c0_56] : memref<2x2x32xf32, #tpu.memory_space<vmem>>, vector<1x2x32xf32>
    %95 = vector.shape_cast %94 : vector<1x2x32xf32> to vector<2x32xf32>
    %cst_57 = arith.constant dense<0.000000e+00> : vector<2x96xf32>
    %96 = tpu.matmul %4, %85, %cst_57 {dimension_numbers = #tpu.dot_dimension_numbers<[1], [0], [0], [1], [0, 0, 1, 1], [], []>} : vector<2x24xf32>, vector<24x96xf32>, vector<2x96xf32> -> vector<2x96xf32>
    %cst_58 = arith.constant 1.000000e+00 : f32
    %97 = vector.broadcast %cst_58 : f32 to vector<2x1xf32>
    %cst_59 = arith.constant 0.000000e+00 : f32
    %98 = vector.broadcast %cst_59 : f32 to vector<2x7xf32>
    %99 = tpu.concatenate %97, %98 in 1 : vector<2x1xf32>, vector<2x7xf32> -> vector<2x8xf32>
    %100 = tpu.concatenate %95, %99 in 1 : vector<2x32xf32>, vector<2x8xf32> -> vector<2x40xf32>
    %cst_60 = arith.constant dense<0.000000e+00> : vector<2x96xf32>
    %101 = tpu.matmul %100, %87, %cst_60 {dimension_numbers = #tpu.dot_dimension_numbers<[1], [0], [0], [1], [0, 0, 1, 1], [], []>} : vector<2x40xf32>, vector<40x96xf32>, vector<2x96xf32> -> vector<2x96xf32>
    %102 = arith.addf %96, %101 : vector<2x96xf32>
    %103 = vector.extract_strided_slice %102 {offsets = [0, 0], sizes = [2, 64], strides = [1, 1]} : vector<2x96xf32> to vector<2x64xf32>
    %104 = arith.negf %103 : vector<2x64xf32>
    %105 = math.exp %104 : vector<2x64xf32>
    %cst_61 = arith.constant 1.000000e+00 : f32
    %106 = vector.broadcast %cst_61 : f32 to vector<2x64xf32>
    %107 = arith.addf %106, %105 : vector<2x64xf32>
    %108 = arith.divf %106, %107 : vector<2x64xf32>
    %109 = vector.extract_strided_slice %108 {offsets = [0, 0], sizes = [2, 32], strides = [1, 1]} : vector<2x64xf32> to vector<2x32xf32>
    %110 = vector.extract_strided_slice %108 {offsets = [0, 32], sizes = [2, 32], strides = [1, 1]} : vector<2x64xf32> to vector<2x32xf32>
    %111 = vector.extract_strided_slice %96 {offsets = [0, 64], sizes = [2, 32], strides = [1, 1]} : vector<2x96xf32> to vector<2x32xf32>
    %112 = vector.extract_strided_slice %101 {offsets = [0, 64], sizes = [2, 32], strides = [1, 1]} : vector<2x96xf32> to vector<2x32xf32>
    %113 = arith.mulf %109, %112 : vector<2x32xf32>
    %114 = arith.addf %111, %113 : vector<2x32xf32>
    %115 = math.tanh %114 : vector<2x32xf32>
    %cst_62 = arith.constant 1.000000e+00 : f32
    %116 = vector.broadcast %cst_62 : f32 to vector<2x32xf32>
    %117 = arith.subf %116, %110 : vector<2x32xf32>
    %118 = arith.mulf %117, %115 : vector<2x32xf32>
    %119 = arith.mulf %110, %95 : vector<2x32xf32>
    %120 = arith.addf %118, %119 : vector<2x32xf32>
    %cst_63 = arith.constant 1.000000e+00 : f32
    %121 = vector.broadcast %cst_63 : f32 to vector<2x1xf32>
    %cst_64 = arith.constant 0.000000e+00 : f32
    %122 = vector.broadcast %cst_64 : f32 to vector<2x7xf32>
    %123 = tpu.concatenate %121, %122 in 1 : vector<2x1xf32>, vector<2x7xf32> -> vector<2x8xf32>
    %124 = tpu.concatenate %120, %123 in 1 : vector<2x32xf32>, vector<2x8xf32> -> vector<2x40xf32>
    %c1_65 = arith.constant 1 : index
    %c0_66 = arith.constant 0 : index
    %c0_67 = arith.constant 0 : index
    %125 = vector.load %arg2[%c1_65, %c0_66, %c0_67] : memref<2x2x32xf32, #tpu.memory_space<vmem>>, vector<1x2x32xf32>
    %126 = vector.shape_cast %125 : vector<1x2x32xf32> to vector<2x32xf32>
    %cst_68 = arith.constant dense<0.000000e+00> : vector<2x96xf32>
    %127 = tpu.matmul %124, %89, %cst_68 {dimension_numbers = #tpu.dot_dimension_numbers<[1], [0], [0], [1], [0, 0, 1, 1], [], []>} : vector<2x40xf32>, vector<40x96xf32>, vector<2x96xf32> -> vector<2x96xf32>
    %cst_69 = arith.constant 1.000000e+00 : f32
    %128 = vector.broadcast %cst_69 : f32 to vector<2x1xf32>
    %cst_70 = arith.constant 0.000000e+00 : f32
    %129 = vector.broadcast %cst_70 : f32 to vector<2x7xf32>
    %130 = tpu.concatenate %128, %129 in 1 : vector<2x1xf32>, vector<2x7xf32> -> vector<2x8xf32>
    %131 = tpu.concatenate %126, %130 in 1 : vector<2x32xf32>, vector<2x8xf32> -> vector<2x40xf32>
    %cst_71 = arith.constant dense<0.000000e+00> : vector<2x96xf32>
    %132 = tpu.matmul %131, %91, %cst_71 {dimension_numbers = #tpu.dot_dimension_numbers<[1], [0], [0], [1], [0, 0, 1, 1], [], []>} : vector<2x40xf32>, vector<40x96xf32>, vector<2x96xf32> -> vector<2x96xf32>
    %133 = arith.addf %127, %132 : vector<2x96xf32>
    %134 = vector.extract_strided_slice %133 {offsets = [0, 0], sizes = [2, 64], strides = [1, 1]} : vector<2x96xf32> to vector<2x64xf32>
    %135 = arith.negf %134 : vector<2x64xf32>
    %136 = math.exp %135 : vector<2x64xf32>
    %cst_72 = arith.constant 1.000000e+00 : f32
    %137 = vector.broadcast %cst_72 : f32 to vector<2x64xf32>
    %138 = arith.addf %137, %136 : vector<2x64xf32>
    %139 = arith.divf %137, %138 : vector<2x64xf32>
    %140 = vector.extract_strided_slice %139 {offsets = [0, 0], sizes = [2, 32], strides = [1, 1]} : vector<2x64xf32> to vector<2x32xf32>
    %141 = vector.extract_strided_slice %139 {offsets = [0, 32], sizes = [2, 32], strides = [1, 1]} : vector<2x64xf32> to vector<2x32xf32>
    %142 = vector.extract_strided_slice %127 {offsets = [0, 64], sizes = [2, 32], strides = [1, 1]} : vector<2x96xf32> to vector<2x32xf32>
    %143 = vector.extract_strided_slice %132 {offsets = [0, 64], sizes = [2, 32], strides = [1, 1]} : vector<2x96xf32> to vector<2x32xf32>
    %144 = arith.mulf %140, %143 : vector<2x32xf32>
    %145 = arith.addf %142, %144 : vector<2x32xf32>
    %146 = math.tanh %145 : vector<2x32xf32>
    %cst_73 = arith.constant 1.000000e+00 : f32
    %147 = vector.broadcast %cst_73 : f32 to vector<2x32xf32>
    %148 = arith.subf %147, %141 : vector<2x32xf32>
    %149 = arith.mulf %148, %146 : vector<2x32xf32>
    %150 = arith.mulf %141, %126 : vector<2x32xf32>
    %151 = arith.addf %149, %150 : vector<2x32xf32>
    %cst_74 = arith.constant 0.000000e+00 : f32
    %152 = vector.broadcast %cst_74 : f32 to vector<2x32xf32>
    %153 = arith.maximumf %151, %152 : vector<2x32xf32>
    %cst_75 = arith.constant 1.000000e+00 : f32
    %154 = vector.broadcast %cst_75 : f32 to vector<2x1xf32>
    %cst_76 = arith.constant 0.000000e+00 : f32
    %155 = vector.broadcast %cst_76 : f32 to vector<2x7xf32>
    %156 = tpu.concatenate %154, %155 in 1 : vector<2x1xf32>, vector<2x7xf32> -> vector<2x8xf32>
    %157 = tpu.concatenate %153, %156 in 1 : vector<2x32xf32>, vector<2x8xf32> -> vector<2x40xf32>
    %cst_77 = arith.constant dense<0.000000e+00> : vector<2x64xf32>
    %158 = tpu.matmul %157, %93, %cst_77 {dimension_numbers = #tpu.dot_dimension_numbers<[1], [0], [0], [1], [0, 0, 1, 1], [], []>} : vector<2x40xf32>, vector<40x64xf32>, vector<2x64xf32> -> vector<2x64xf32>
    %159 = tpu.concatenate %120, %151, %158 in 1 : vector<2x32xf32>, vector<2x32xf32>, vector<2x64xf32> -> vector<2x128xf32>
    %c1_78 = arith.constant 1 : index
    %c0_79 = arith.constant 0 : index
    %c0_80 = arith.constant 0 : index
    %160 = vector.load %arg4[%c1_78, %c0_79, %c0_80] : memref<2x2x128xf32, #tpu.memory_space<vmem>>, vector<1x2x128xf32>
    %161 = vector.shape_cast %160 : vector<1x2x128xf32> to vector<2x128xf32>
    %162 = vector.shape_cast %159 : vector<2x128xf32> to vector<1x2x128xf32>
    tpu.vector_store %arg4[%c1_78, %c0_79, %c0_80], %162 {strides = array<i32>} : memref<2x2x128xf32, #tpu.memory_space<vmem>>, vector<1x2x128xf32>,
    return
  }
}

</mosaic_0001>

<bundles_post_ra>
// kernel: actor_critic_gru_forward.1
= control target key start
LH: loop header
LB: loop body
LE: loop exit
PB: predicated region body
PF: predicated region fallthrough
CT: control target
= control target key end

     0   :  { %9 = vsyncpa [#allocation3], 0  ;;  %s873_s0 = inlined_call_operand.hbm [shape: f32[2,16], index: 0, kind: input, shape index: {}]   ;;  %s874_s1 = inlined_call_operand.hbm [shape: f32[2,2,32], index: 1, kind: input, shape index: {}]   ;;  %s875_s2 = inlined_call_operand.hbm [shape: f32[2,2,32], index: 2, kind: input, shape index: {}]   ;;  %s876_s3 = inlined_call_operand.hbm [shape: f32[2,184,128], index: 3, kind: input, shape index: {}]   ;;  %s877_s4 = inlined_call_operand.vmem [shape: f32[2,2,128], index: 4, kind: output, shape index: {}]  }
   0x1   :  { %10 = vsyncpa [#allocation5], 0  ;;  %s27_s17 = sshll.u32 %s874_s1, 4  ;;  %s28_s17 = int_to_ptr.hbm [resolvable:$true] %s27_s17 }
   0x2   :  { %11 = vsyncpa [#allocation8], 0  ;;  %s747_s18 = smov [#allocation4]   ;;  %s17_s22 = sshll.u32 %s873_s0, 4  ;;  %s18_s22 = int_to_ptr.hbm [resolvable:$true] %s17_s22 }
   0x3   :  { %s29_s19 = sshll.u32 %s747_s18, 4  ;;  %s748_s23 = smov 32   ;;  %s30_s19 = int_to_ptr.vmem [resolvable:$true] %s29_s19 }
   0x4   :  { %s749_s24 = smov 2   ;;  %s750_s25 = smov [#allocation2]  }
   0x5   :  { %35 = dma.hbm_to_vmem [thread:$0]  %s28_s17, 64, %s30_s19, [#allocation5], %s748_s23, %s748_s23, %s749_s24  }
   0x6   :  { %s19_s26 = sshll.u32 %s750_s25, 4  ;;  %s40_s1 = sshll.u32 %s875_s2, 4  ;;  %s20_s26 = int_to_ptr.vmem [resolvable:$true] %s19_s26  ;;  %s41_s1 = int_to_ptr.hbm [resolvable:$true] %s40_s1 }
   0x7   :  { %22 = dma.hbm_to_vmem [thread:$0]  %s18_s22, 32, %s20_s26, [#allocation3]  }
   0x8   :  { %s53_s5 = sshll.u32 %s876_s3, 4  ;;  %s751_s0 = smov [#allocation6]   ;;  %s54_s5 = int_to_ptr.hbm [resolvable:$true] %s53_s5 }
   0x9   :  { %s42_s6 = sshll.u32 %s751_s0, 4  ;;  %s752_s7 = smov [#allocation7]   ;;  %s43_s6 = int_to_ptr.vmem [resolvable:$true] %s42_s6 }
   0xa   :  { %48 = dma.hbm_to_vmem [thread:$0]  %s41_s1, 64, %s43_s6, [#allocation5], %s748_s23, %s748_s23, %s749_s24  }
   0xb   :  { %s55_s8 = sshll.u32 %s752_s7, 4  ;;  %s753_s9 = smov 128   ;;  %s56_s8 = int_to_ptr.vmem [resolvable:$true] %s55_s8 }
   0xc   :  { %s754_s10 = smov 8  }
   0xd   :  { %61 = dma.hbm_to_vmem [thread:$0]  %s54_s5, 5888, %s56_s8, [#allocation8], %s753_s9, %s753_s9, %s754_s10  }
   0xe   :  { %741 = dma.done.wait [#allocation3], 32  }
   0xf   :  { %742 = vsyncadd [#allocation3], 4294967264 }
  0x10   :  { %743 = dma.done.wait [#allocation5], 128  }
  0x11   :  { %744 = vsyncadd [#allocation5], 4294967168  ;;  %vm79_vm0 = vcmask 7168  }
  0x12   :  { %745 = dma.done.wait [#allocation8], 5888  }
  0x13   :  { %746 = vsyncadd [#allocation8], 4294961408  ;;  %v755_v0 = vmov 0.0   ;;  %v94_v2 = vld [vmem:[#allocation7 + $0x38] sm:$0xff]  ;;  %v104_v3 = vld [vmem:[#allocation7 + $0x88] sm:$0xff]  ;;  %s756_s2 = smov 16  }
  0x14   :  { %v80_v1 = vsel %vm79_vm0, 1.0, %v755_v0  ;;  %v93_v4 = vld [vmem:[#allocation7 + $0x30] sm:$0xff]  ;;  %155 = vmatpush.msra.mxu1 %v94_v2  ;;  %252 = vmatpush.msra.mxu3 %v104_v3  ;;  %v103_v5 = vld [vmem:[#allocation7 + $0x80] sm:$0xff]  ;;  %v92_v6 = vld [vmem:[#allocation7 + $0x28] sm:$0xff]  ;;  %vm138_vm1 = vcmask 261120   ;;  %vm140_vm2 = vcmask 326656  }
  0x15   :  { %135 = vrot.lane.b32.xlu0 %v80_v1, %s748_s23  ;;  %v102_v7 = vld [vmem:[#allocation7 + $0x78] sm:$0xff]  ;;  %v91_v8 = vld [vmem:[#allocation7 + $0x20] sm:$0xff]  ;;  %v101_v9 = vld [vmem:[#allocation7 + $0x70] sm:$0xff]  ;;  %vm85_vm3 = vcmask 130048   ;;  %vm111_vm4 = vcmask 195584   ;;  %s757_s3 = smov 64  }
  0x16   :  { %156 = vmatpush.msra.mxu1 %v93_v4  ;;  %253 = vmatpush.msra.mxu3 %v103_v5  ;;  %v90_v10 = vld [vmem:[#allocation7 + $0x18] sm:$0xff]  ;;  %v100_v11 = vld [vmem:[#allocation7 + $0x68] sm:$0xff]  ;;  %v89_v12 = vld [vmem:[#allocation7 + $0x10] sm:$0xff]  ;;  %s758_s11 = smov 96  }
  0x17   :  { %v88_v13 = vld [vmem:[#allocation7 + $0x8] sm:$0xff]  ;;  %128 = vmatpush.msra.mxu0 %v89_v12  ;;  %v87_v14 = vld [vmem:[#allocation7] sm:$0xff]  ;;  %v342_v17 = vld [vmem:[#allocation7 + $0xb8] sm:$0xff] }
  0x18   :  { %157 = vmatpush.msra.mxu1 %v92_v6  ;;  %254 = vmatpush.msra.mxu3 %v102_v7  ;;  %v344_v15 = vld [vmem:[#allocation7 + $0xc8] sm:$0xff]  ;;  %v343_v16 = vld [vmem:[#allocation7 + $0xc0] sm:$0xff]  ;;  %v110_v18 = vld [vmem:[#allocation4] sm:$0x3] }
  0x19   :  { %129 = vmatpush.msra.mxu0 %v88_v13  ;;  %v801_v19 = vld [vmem:[#allocation4 + $0x2] sm:$0x3]  ;;  %v78_v23 = vld [vmem:[#allocation2] sm:$0x3]  ;;  %v99_v48 = vld [vmem:[#allocation7 + $0x60] sm:$0xff] }
  0x1a   :  { %158 = vmatpush.msra.mxu1 %v91_v8  ;;  %255 = vmatpush.msra.mxu3 %v101_v9  ;;  %v98_v49 = vld [vmem:[#allocation7 + $0x58] sm:$0xff]  ;;  %v97_v50 = vld [vmem:[#allocation7 + $0x50] sm:$0xff]  ;;  %v96_v51 = vld [vmem:[#allocation7 + $0x48] sm:$0xff] }
  0x1b   :  { %130 = vmatpush.msra.mxu0 %v87_v14  ;;  %228 = vmatpush.msra.mxu2 %v99_v48  ;;  %v95_v52 = vld [vmem:[#allocation7 + $0x40] sm:$0xff]  ;;  %v349_v59 = vld [vmem:[#allocation7 + $0xf0] sm:$0xff]  ;;  %v348_v60 = vld [vmem:[#allocation7 + $0xe8] sm:$0xff] }
  0x1c   :  { %159 = vmatpush.msra.mxu1 %v90_v10  ;;  %256 = vmatpush.msra.mxu3 %v100_v11  ;;  %v347_v61 = vld [vmem:[#allocation7 + $0xe0] sm:$0xff]  ;;  %v346_v62 = vld [vmem:[#allocation7 + $0xd8] sm:$0xff]  ;;  %v345_v63 = vld [vmem:[#allocation7 + $0xd0] sm:$0xff] }
  0x1d   :  { %82 = vrot.lane.b32.xlu0 %v80_v1, %s756_s2  ;;  %229 = vmatpush.msra.mxu2 %v98_v49  ;;  %v365_v2 = vld [vmem:[#allocation6] sm:$0x3] }
  0x1e   :  { %379 = vmatpush.msrb.mxu1 %v344_v15 }
  0x1f   :  { %230 = vmatpush.msra.mxu2 %v97_v50 }
  0x20   :  { %380 = vmatpush.msrb.mxu1 %v343_v16 }
  0x21   :  { %231 = vmatpush.msra.mxu2 %v96_v51 }
  0x22   :  { %381 = vmatpush.msrb.mxu1 %v342_v17 }
  0x23   :  { %232 = vmatpush.msra.mxu2 %v95_v52 }
  0x25   :  { %401 = vmatpush.msrb.mxu2 %v349_v59 }
  0x27   :  { %402 = vmatpush.msrb.mxu2 %v348_v60  ;;  %v358_v60 = vld [vmem:[#allocation7 + $0x138] sm:$0xff] }
  0x29   :  { %403 = vmatpush.msrb.mxu2 %v347_v61  ;;  %v357_v61 = vld [vmem:[#allocation7 + $0x130] sm:$0xff] }
  0x2b   :  { %404 = vmatpush.msrb.mxu2 %v346_v62 }
  0x2d   :  { %405 = vmatpush.msrb.mxu2 %v345_v63 }
  0x87   :  { %v803_v20 = vpop.permute.xlu0 %135 }
  0x88   :  { %v139_v21 = vsel %vm138_vm1, %v110_v18, %v803_v20  ;;  %v237_v22 = vsel %vm138_vm1, %v801_v19, %v803_v20  ;;  %v386_v3 = vsel %vm138_vm1, %v365_v2, %v803_v20 }
  0x89   :  { %595 = vmatmul.msk.f32.vlgmr.msra.gmra.mxu1 %vm140_vm2, %v139_v21  ;;  %598 = vmatmul.msk.f32.vlgmr.msra.gmra.mxu3 %vm140_vm2, %v237_v22 }
  0x8f   :  { %v83_v24 = vpop.permute.xlu0 %82 }
  0x90   :  { %v86_v25 = vsel %vm85_vm3, %v78_v23, %v83_v24 }
  0x91   :  { %594 = vmatmul.msk.f32.vlgmr.msra.gmra.mxu0 %vm111_vm4, %v86_v25  ;;  %601 = vmatmul.msk.f32.vlgmr.msrb.gmra.mxu1 %vm111_vm4, %v86_v25 }
 0x106   :  { %v161_v26 = vpop.f32.mrf.mxu1 }
 0x107   :  { %185 = vrot.lane.b32.xlu1 %v161_v26, %s757_s3 }
 0x10c   :  { %v258_v44 = vpop.f32.mrf.mxu3 }
 0x10e   :  { %v132_v27 = vpop.f32.mrf.mxu0  ;;  %v383_v24 = vpop.f32.mrf.mxu1 }
 0x10f   :  { %v164_v28 = vadd.f32 %v161_v26, %v132_v27 }
 0x111   :  { %v596_v29 = vmul.f32 -1.442695, %v164_v28 }
 0x113   :  { %621 = vpow2.f32 %v596_v29 }
 0x119   :  { %v622_v30 = vpop.eup %621 }
 0x11a   :  { %v168_v31 = vadd.f32 1.0, %v622_v30 }
 0x11c   :  { %623 = vrcp.f32 %v168_v31  ;;  %v180_v37 = vand.u32 2147483648, %v168_v31  ;;  %vm174_vm6 = vweird.f32 %v168_v31  ;;  %v178_v38 = vand.u32 2147483647, %v168_v31 }
 0x11e   :  { %v181_v40 = vor.u32 1.1754944e-38, %v180_v37  ;;  %vm179_vm8 = vcmp.eq.f32.partialorder %v178_v38, 8.507059e+37 }
 0x122   :  { %v624_v32 = vpop.eup %623 }
 0x123   :  { %v170_v33 = vmul.f32 %v624_v32, %v168_v31  ;;  %vm175_vm5 = vweird.f32 %v624_v32 }
 0x124   :  { %vm176_vm7 = vmor %vm174_vm6, %vm175_vm5 }
 0x125   :  { %v171_v34 = vsub.f32 1.0, %v170_v33 }
 0x127   :  { %v172_v35 = vmul.f32 %v624_v32, %v171_v34 }
 0x129   :  { %v173_v36 = vadd.f32 %v624_v32, %v172_v35 }
 0x12b   :  { %v177_v39 = vsel %vm176_vm7, %v624_v32, %v173_v36  ;;  %vm338_vm7 = vcmask 523264  }
 0x12c   :  { %v182_v42 = vsel %vm179_vm8, %v181_v40, %v177_v39 }
 0x12d   :  { %v195_v54 = vsub.f32 1.0, %v182_v42 }
 0x179   :  { %v186_v41 = vpop.permute.xlu1 %185 }
 0x17a   :  { %v188_v43 = vmul.f32 %v186_v41, %v182_v42 }
 0x17c   :  { %190 = vrot.lane.b32.xlu1 %v188_v43, %s757_s3 }
 0x184   :  { %282 = vrot.lane.b32.xlu1 %v258_v44, %s757_s3 }
 0x1ee   :  { %v191_v45 = vpop.permute.xlu1 %190 }
 0x1ef   :  { %v193_v46 = vadd.f32 %v191_v45, %v132_v27 }
 0x1f1   :  { %625 = vtanh.f32 %v193_v46 }
 0x1f6   :  { %v283_v21 = vpop.permute.xlu1 %282 }
 0x1f7   :  { %v626_v47 = vpop.eup %625 }
 0x1f8   :  { %197 = vrot.lane.b32.xlu2 %v626_v47, %s758_s11 }
 0x200   :  { %202 = vrot.lane.b32.xlu2 %v110_v18, %s748_s23 }
 0x252   :  { %v198_v53 = vpop.permute.xlu2 %197 }
 0x253   :  { %v200_v56 = vmul.f32 %v198_v53, %v195_v54  ;;  %v109_v53 = vld [vmem:[#allocation7 + $0xb0] sm:$0xff]  ;;  %v108_v54 = vld [vmem:[#allocation7 + $0xa8] sm:$0xff] }
 0x254   :  { %324 = vmatpush.msrb.mxu0 %v109_v53 }
 0x256   :  { %325 = vmatpush.msrb.mxu0 %v108_v54 }
 0x25a   :  { %v203_v55 = vpop.permute.xlu2 %202 }
 0x25b   :  { %v205_v57 = vmul.f32 %v203_v55, %v182_v42  ;;  %v107_v55 = vld [vmem:[#allocation7 + $0xa0] sm:$0xff] }
 0x25c   :  { %326 = vmatpush.msrb.mxu0 %v107_v55  ;;  %v360_v55 = vld [vmem:[#allocation7 + $0x148] sm:$0xff] }
 0x25d   :  { %v206_v58 = vadd.f32 %v205_v57, %v200_v56  ;;  %v106_v56 = vld [vmem:[#allocation7 + $0x98] sm:$0xff]  ;;  %v105_v57 = vld [vmem:[#allocation7 + $0x90] sm:$0xff] }
 0x25e   :  { %327 = vmatpush.msrb.mxu0 %v106_v56 }
 0x25f   :  { %208 = vrot.lane.b32.xlu0 %v206_v58, %s758_s11  ;;  %v359_v58 = vld [vmem:[#allocation7 + $0x140] sm:$0xff] }
 0x260   :  { %328 = vmatpush.msrb.mxu0 %v105_v57 }
 0x262   :  { %498 = vmatpush.msra.mxu0 %v359_v58 }
 0x264   :  { %499 = vmatpush.msra.mxu0 %v358_v60 }
 0x266   :  { %500 = vmatpush.msra.mxu0 %v357_v61 }
 0x2d1   :  { %v818_v0 = vpop.permute.xlu0 %208 }
 0x2d2   :  { %v211_v1 = vsel %vm138_vm1, %v818_v0, %v803_v20 }
 0x2d3   :  { %597 = vmatmul.msk.f32.vlgmr.msra.gmra.mxu2 %vm140_vm2, %v211_v1  ;;  %v356_v1 = vld [vmem:[#allocation7 + $0x128] sm:$0xff] }
 0x2d4   :  { %501 = vmatpush.msra.mxu0 %v356_v1 }
 0x2db   :  { %602 = vmatmul.msk.f32.vlgmr.msrb.gmra.mxu2 %vm140_vm2, %v386_v3 }
 0x356   :  { %v234_v4 = vpop.f32.mrf.mxu2 }
 0x357   :  { %v261_v5 = vadd.f32 %v258_v44, %v234_v4 }
 0x359   :  { %v599_v6 = vmul.f32 -1.442695, %v261_v5 }
 0x35b   :  { %627 = vpow2.f32 %v599_v6  ;;  %v354_v6 = vld [vmem:[#allocation7 + $0x118] sm:$0xff] }
 0x35c   :  { %474 = vmatpush.msrb.mxu3 %v354_v6 }
 0x35e   :  { %v407_v7 = vpop.f32.mrf.mxu2 }
 0x35f   :  { %431 = vrot.lane.b32.xlu2 %v407_v7, %s757_s3  ;;  %v410_v25 = vadd.f32 %v407_v7, %v383_v24  ;;  %v353_v7 = vld [vmem:[#allocation7 + $0x110] sm:$0xff] }
 0x360   :  { %475 = vmatpush.msrb.mxu3 %v353_v7 }
 0x361   :  { %v628_v8 = vpop.eup %627  ;;  %v603_v26 = vmul.f32 -1.442695, %v410_v25 }
 0x362   :  { %v265_v9 = vadd.f32 1.0, %v628_v8  ;;  %v352_v8 = vld [vmem:[#allocation7 + $0x108] sm:$0xff] }
 0x363   :  { %476 = vmatpush.msrb.mxu3 %v352_v8 }
 0x364   :  { %629 = vrcp.f32 %v265_v9  ;;  %v277_v13 = vand.u32 2147483648, %v265_v9  ;;  %v275_v15 = vand.u32 2147483647, %v265_v9  ;;  %vm271_vm10 = vweird.f32 %v265_v9 }
 0x365   :  { %631 = vpow2.f32 %v603_v26 }
 0x366   :  { %v278_v17 = vor.u32 1.1754944e-38, %v277_v13  ;;  %vm276_vm12 = vcmp.eq.f32.partialorder %v275_v15, 8.507059e+37 }
 0x36a   :  { %v630_v10 = vpop.eup %629 }
 0x36b   :  { %v267_v11 = vmul.f32 %v630_v10, %v265_v9  ;;  %vm272_vm9 = vweird.f32 %v630_v10  ;;  %v632_v27 = vpop.eup %631  ;;  %v351_v9 = vld [vmem:[#allocation7 + $0x100] sm:$0xff] }
 0x36c   :  { %vm273_vm11 = vmor %vm271_vm10, %vm272_vm9  ;;  %v414_v28 = vadd.f32 1.0, %v632_v27  ;;  %477 = vmatpush.msrb.mxu3 %v351_v9 }
 0x36d   :  { %v268_v12 = vsub.f32 1.0, %v267_v11 }
 0x36e   :  { %633 = vrcp.f32 %v414_v28  ;;  %v426_v34 = vand.u32 2147483648, %v414_v28  ;;  %vm420_vm14 = vweird.f32 %v414_v28  ;;  %v424_v35 = vand.u32 2147483647, %v414_v28 }
 0x36f   :  { %v269_v14 = vmul.f32 %v630_v10, %v268_v12  ;;  %v459_v12 = vld [vmem:[#allocation6 + $0x2] sm:$0x3] }
 0x370   :  { %v427_v37 = vor.u32 1.1754944e-38, %v426_v34  ;;  %vm425_vm0 = vcmp.eq.f32.partialorder %v424_v35, 8.507059e+37  ;;  %v483_v13 = vsel %vm138_vm1, %v459_v12, %v803_v20 }
 0x371   :  { %v270_v16 = vadd.f32 %v630_v10, %v269_v14  ;;  %v350_v14 = vld [vmem:[#allocation7 + $0xf8] sm:$0xff] }
 0x372   :  { %478 = vmatpush.msrb.mxu3 %v350_v14 }
 0x373   :  { %v274_v18 = vsel %vm273_vm11, %v630_v10, %v270_v16 }
 0x374   :  { %v279_v22 = vsel %vm276_vm12, %v278_v17, %v274_v18  ;;  %v634_v29 = vpop.eup %633 }
 0x375   :  { %v285_v23 = vmul.f32 %v283_v21, %v279_v22  ;;  %v416_v30 = vmul.f32 %v634_v29, %v414_v28  ;;  %vm421_vm13 = vweird.f32 %v634_v29  ;;  %v292_v47 = vsub.f32 1.0, %v279_v22 }
 0x376   :  { %vm422_vm15 = vmor %vm420_vm14, %vm421_vm13 }
 0x377   :  { %287 = vrot.lane.b32.xlu0 %v285_v23, %s757_s3  ;;  %v417_v31 = vsub.f32 1.0, %v416_v30 }
 0x379   :  { %v418_v32 = vmul.f32 %v634_v29, %v417_v31 }
 0x37b   :  { %v419_v33 = vadd.f32 %v634_v29, %v418_v32 }
 0x37d   :  { %v423_v36 = vsel %vm422_vm15, %v634_v29, %v419_v33 }
 0x37e   :  { %v428_v38 = vsel %vm425_vm0, %v427_v37, %v423_v36 }
 0x37f   :  { %299 = vrot.lane.b32.xlu0 %v801_v19, %s748_s23  ;;  %v441_v62 = vsub.f32 1.0, %v428_v38 }
 0x3b9   :  { %v432_v19 = vpop.permute.xlu2 %431 }
 0x3ba   :  { %v434_v39 = vmul.f32 %v432_v19, %v428_v38 }
 0x3bc   :  { %436 = vrot.lane.b32.xlu1 %v434_v39, %s757_s3 }
 0x3e9   :  { %v288_v40 = vpop.permute.xlu0 %287 }
 0x3ea   :  { %v290_v41 = vadd.f32 %v288_v40, %v234_v4  ;;  %v355_v4 = vld [vmem:[#allocation7 + $0x120] sm:$0xff]  ;;  %v364_v40 = vld [vmem:[#allocation7 + $0x168] sm:$0xff] }
 0x3eb   :  { %502 = vmatpush.msra.mxu0 %v355_v4  ;;  %570 = vmatpush.msra.mxu1 %v364_v40 }
 0x3ec   :  { %635 = vtanh.f32 %v290_v41  ;;  %v363_v41 = vld [vmem:[#allocation7 + $0x160] sm:$0xff] }
 0x3ed   :  { %571 = vmatpush.msra.mxu1 %v363_v41 }
 0x3f1   :  { %v300_v46 = vpop.permute.xlu0 %299 }
 0x3f2   :  { %v636_v42 = vpop.eup %635  ;;  %v302_v49 = vmul.f32 %v300_v46, %v279_v22 }
 0x3f3   :  { %294 = vrot.lane.b32.xlu2 %v636_v42, %s758_s11  ;;  %v362_v42 = vld [vmem:[#allocation7 + $0x158] sm:$0xff] }
 0x3f4   :  { %572 = vmatpush.msra.mxu1 %v362_v42 }
 0x3fb   :  { %448 = vrot.lane.b32.xlu2 %v365_v2, %s748_s23 }
 0x42e   :  { %v437_v43 = vpop.permute.xlu1 %436 }
 0x42f   :  { %v439_v44 = vadd.f32 %v437_v43, %v383_v24  ;;  %v361_v43 = vld [vmem:[#allocation7 + $0x150] sm:$0xff] }
 0x430   :  { %573 = vmatpush.msra.mxu1 %v361_v43 }
 0x431   :  { %637 = vtanh.f32 %v439_v44 }
 0x432   :  { %574 = vmatpush.msra.mxu1 %v360_v55 }
 0x437   :  { %v638_v45 = vpop.eup %637 }
 0x438   :  { %443 = vrot.lane.b32.xlu1 %v638_v45, %s758_s11 }
 0x44d   :  { %v295_v48 = vpop.permute.xlu2 %294 }
 0x44e   :  { %v297_v50 = vmul.f32 %v295_v48, %v292_v47 }
 0x450   :  { %v835_v51 = vadd.f32 %v302_v49, %v297_v50 }
 0x452   :  { %v304_v52 = vmax.f32 %v835_v51, 0.0 }
 0x454   :  { %306 = vrot.lane.b32.xlu0 %v304_v52, %s758_s11  ;;  %v337_v52 = vsel %vm138_vm1, %v818_v0, %v835_v51 }
 0x455   :  { %v449_v59 = vpop.permute.xlu2 %448 }
 0x456   :  { %v451_v2 = vmul.f32 %v449_v59, %v428_v38 }
 0x4aa   :  { %v444_v63 = vpop.permute.xlu1 %443 }
 0x4ab   :  { %v446_v3 = vmul.f32 %v444_v63, %v441_v62 }
 0x4ad   :  { %v452_v5 = vadd.f32 %v451_v2, %v446_v3 }
 0x4af   :  { %454 = vrot.lane.b32.xlu1 %v452_v5, %s758_s11 }
 0x4c6   :  { %v307_v10 = vpop.permute.xlu0 %306 }
 0x4c7   :  { %v309_v11 = vsel %vm138_vm1, %v307_v10, %v803_v20 }
 0x4c8   :  { %600 = vmatmul.msk.f32.vlgmr.msrb.gmra.mxu0 %vm140_vm2, %v309_v11 }
 0x4d0   :  { %605 = vmatmul.msk.f32.vlgmr.msra.gmra.mxu0 %vm140_vm2, %v483_v13 }
 0x521   :  { %v846_v15 = vpop.permute.xlu1 %454 }
 0x522   :  { %v457_v16 = vsel %vm138_vm1, %v846_v15, %v803_v20 }
 0x523   :  { %604 = vmatmul.msk.f32.vlgmr.msrb.gmra.mxu3 %vm140_vm2, %v457_v16 }
 0x545   :  { %v330_v17 = vpop.f32.mrf.mxu0 }
 0x54d   :  { %v504_v18 = vpop.f32.mrf.mxu0 }
 0x54e   :  { %528 = vrot.lane.b32.xlu2 %v504_v18, %s757_s3 }
 0x556   :  { %545 = vrot.lane.b32.xlu2 %v459_v12, %s748_s23 }
 0x5a6   :  { %v480_v21 = vpop.f32.mrf.mxu3 }
 0x5a7   :  { %v507_v22 = vadd.f32 %v504_v18, %v480_v21 }
 0x5a8   :  { %v529_v35 = vpop.permute.xlu2 %528 }
 0x5a9   :  { %v606_v23 = vmul.f32 -1.442695, %v507_v22 }
 0x5ab   :  { %639 = vpow2.f32 %v606_v23 }
 0x5b0   :  { %v546_v44 = vpop.permute.xlu2 %545 }
 0x5b1   :  { %v640_v24 = vpop.eup %639 }
 0x5b2   :  { %v511_v25 = vadd.f32 1.0, %v640_v24 }
 0x5b4   :  { %641 = vrcp.f32 %v511_v25  ;;  %v523_v29 = vand.u32 2147483648, %v511_v25  ;;  %v521_v31 = vand.u32 2147483647, %v511_v25  ;;  %vm517_vm4 = vweird.f32 %v511_v25 }
 0x5b6   :  { %v524_v33 = vor.u32 1.1754944e-38, %v523_v29  ;;  %vm522_vm6 = vcmp.eq.f32.partialorder %v521_v31, 8.507059e+37 }
 0x5ba   :  { %v642_v26 = vpop.eup %641 }
 0x5bb   :  { %v513_v27 = vmul.f32 %v642_v26, %v511_v25  ;;  %vm518_vm3 = vweird.f32 %v642_v26 }
 0x5bc   :  { %vm519_vm5 = vmor %vm517_vm4, %vm518_vm3 }
 0x5bd   :  { %v514_v28 = vsub.f32 1.0, %v513_v27 }
 0x5bf   :  { %v515_v30 = vmul.f32 %v642_v26, %v514_v28 }
 0x5c1   :  { %v516_v32 = vadd.f32 %v642_v26, %v515_v30 }
 0x5c3   :  { %v520_v34 = vsel %vm519_vm5, %v642_v26, %v516_v32 }
 0x5c4   :  { %v525_v36 = vsel %vm522_vm6, %v524_v33, %v520_v34 }
 0x5c5   :  { %v531_v37 = vmul.f32 %v529_v35, %v525_v36  ;;  %v538_v45 = vsub.f32 1.0, %v525_v36  ;;  %v548_v47 = vmul.f32 %v546_v44, %v525_v36 }
 0x5c7   :  { %533 = vrot.lane.b32.xlu0 %v531_v37, %s757_s3 }
 0x639   :  { %v534_v19 = vpop.permute.xlu0 %533 }
 0x63a   :  { %v536_v38 = vadd.f32 %v534_v19, %v480_v21 }
 0x63c   :  { %643 = vtanh.f32 %v536_v38 }
 0x642   :  { %v644_v39 = vpop.eup %643 }
 0x643   :  { %540 = vrot.lane.b32.xlu1 %v644_v39, %s758_s11 }
 0x64b   :  { %334 = vrot.lane.b32.xlu1 %v330_v17, %s757_s3 }
 0x6b5   :  { %v541_v46 = vpop.permute.xlu1 %540 }
 0x6b6   :  { %v543_v48 = vmul.f32 %v541_v46, %v538_v45 }
 0x6b8   :  { %v549_v49 = vadd.f32 %v548_v47, %v543_v48 }
 0x6ba   :  { %v550_v50 = vmax.f32 %v549_v49, 0.0  ;;  %v583_v0 = vsel %vm138_vm1, %v846_v15, %v549_v49 }
 0x6bc   :  { %552 = vrot.lane.b32.xlu0 %v550_v50, %s758_s11 }
 0x6bd   :  { %v335_v53 = vpop.permute.xlu1 %334 }
 0x6be   :  { %v339_v54 = vsel %vm338_vm7, %v337_v52, %v335_v53 }
 0x6bf   :  { %340 = vst [vmem:[%s877_s4] sm:$0x3] %v339_v54 }
 0x72e   :  { %v553_v56 = vpop.permute.xlu0 %552 }
 0x72f   :  { %v555_v57 = vsel %vm138_vm1, %v553_v56, %v803_v20 }
 0x730   :  { %607 = vmatmul.msk.f32.vlgmr.msra.gmra.mxu1 %vm140_vm2, %v555_v57 }
 0x7ad   :  { %v576_v58 = vpop.f32.mrf.mxu1 }
 0x7ae   :  { %580 = vrot.lane.b32.xlu2 %v576_v58, %s757_s3 }
 0x808   :  { %v581_v51 = vpop.permute.xlu2 %580 }
 0x809   :  { %v584_v59 = vsel %vm338_vm7, %v583_v0, %v581_v51 }
 0x80a   :  { %608 = vst [vmem:[%s877_s4 + $0x2] sm:$0x3] %v584_v59 }
 0x80b   :  { %591 = vsyncpa [#allocation3], 1 }
 0x80c   :  { %592 = vsyncpa [#allocation5], 1 }
 0x80d   :  { %593 = vsyncpa [#allocation8], 1 }

</bundles_post_ra>
